<compile_context>
chip_gen: v5e
topology: v5e:2x2
jax: 0.10.0
libtpu: 0.0.40
codegen_flags: <defaults>
</compile_context>

<pallas_src>
import functools

import jax
import jax.numpy as jnp
from jax import lax
from jax.experimental import pallas as pl
from jax.experimental.pallas import tpu as pltpu

EPS = 1e-5


def _expand_norm_kernel(x_ref, w_ref, gm_ref, gb_ref, g_ref, b_ref, o_ref,
                        *, dense_minor_merge):
    # x_ref : (tr*W, C)        input pixels for `tr` output-row groups
    # w_ref : (ds, C, C)       expand weight, pre-split along p1
    # gm_ref: (width, n_g)     group "mean" indicator (1/c_out inside group)
    # gb_ref: (n_g, width)     group broadcast indicator (0/1)
    # g_ref : (1, width)       gamma, tiled once per LayerNorm group
    # b_ref : (1, width)       beta,  tiled once per LayerNorm group
    # o_ref : dense: (tr, ds*W*C)   fallback: (tr, ds, W, C)
    rows, C = x_ref.shape
    ds = w_ref.shape[0]
    tr = o_ref.shape[0]
    W = rows // tr

    x = x_ref[...]
    gm = gm_ref[...]
    gb = gb_ref[...]
    gamma = g_ref[...]
    beta = b_ref[...]

    for p1 in range(ds):                       # static unroll (ds == 2)
        # Half of the 2C-channel expansion on the MXU, f32 accumulation.
        # Pre-split weight -> no non-128-aligned lane slice of the result.
        y = jnp.dot(x, w_ref[p1], preferred_element_type=jnp.float32)  # (rows, C)

        if dense_minor_merge:
            # Densify into the output-row layout (w, p2, c) up front: every
            # LayerNorm / elementwise op and the store run at full lane width.
            z = y.reshape(tr, W * C)
        else:
            z = y                              # (rows, C): lane-sparse but safe

        # Grouped LayerNorm (groups of c_out channels): mean and *centered*
        # variance computed as indicator matmuls on the otherwise-idle MXU,
        # avoiding the lane-sparse (rows, groups, c_out) view and XLU reduces.
        mu = jnp.dot(jnp.dot(z, gm, preferred_element_type=jnp.float32),
                     gb, preferred_element_type=jnp.float32)
        d = z - mu
        var_g = jnp.dot(d * d, gm, preferred_element_type=jnp.float32)
        inv = jnp.dot(lax.rsqrt(var_g + EPS), gb,
                      preferred_element_type=jnp.float32)
        out = (d * inv * gamma + beta).astype(o_ref.dtype)

        if dense_minor_merge:
            # One aligned, unmasked full-width store per p1 half.
            o_ref[:, p1 * (W * C):(p1 + 1) * (W * C)] = out
        else:
            o_ref[:, p1, :, :] = out.reshape(tr, W, C)


def _ln_constants(width, c_out, gamma, beta):
    """Indicator matrices + tiled affine params for the grouped LayerNorm."""
    n_g = width // c_out
    grp = jnp.arange(width, dtype=jnp.int32) // c_out
    gid = jnp.arange(n_g, dtype=jnp.int32)
    gm = (grp[:, None] == gid[None, :]).astype(jnp.float32) / float(c_out)
    gb = (gid[:, None] == grp[None, :]).astype(jnp.float32)
    g = jnp.tile(gamma.astype(jnp.float32), n_g).reshape(1, width)
    b = jnp.tile(beta.astype(jnp.float32), n_g).reshape(1, width)
    return gm, gb, g, b


def _pick_row_tile(BH, W, C, ds, itemsize, resident_bytes):
    """Largest row tile `tr` (exact divisor of B*H, multiple of 8 so every block
    stays (8,128)-legal) whose double-buffered in/out blocks plus f32
    temporaries fit a VMEM budget sized for v7x (64 MiB / TensorCore), while
    keeping the grid >= 2 steps so v7x's two TensorCores both get work."""
    # per output row: x block W*C*it and out block ds*W*C*it (each x2 buffers),
    # plus ~6 f32 temporaries (y, z, mu, d, inv, normalized result).
    per_row = (2 + 2 * ds) * W * C * itemsize + 6 * W * C * 4
    budget = max((32 << 20) - resident_bytes, per_row)
    max_tr = min(budget // per_row, max(1, BH // 2))
    best = None
    for t in range(8, BH + 1, 8):
        if BH % t == 0 and t <= max_tr:
            best = t
    if best is None:
        best = BH          # single step; block == full array is always legal
    return best


def patch_expand2d(x, w_t, gamma, beta, dim_scale=2):
    """x: (B, H, W, C) with C == 2*dim.  w_t: (C, dim_scale*C) == Linear weight^T.
    gamma/beta: (C // dim_scale,).  Returns (B, 2H, 2W, C // dim_scale).
    Inputs may be bf16 (f32 accumulation / norm math is kept inside)."""
    B, H, W, C = x.shape
    ds = dim_scale
    c_out = C // ds
    assert C == ds * c_out and w_t.shape == (C, ds * C), (x.shape, w_t.shape)
    BH = B * H
    lane = W * C                      # output lane width per p1 (= W*ds*c_out)

    # p1-split weight: (C, ds*C) -> (ds, C, C); kernel indexes the lead axis.
    w_split = jnp.transpose(w_t.reshape(C, ds, C), (1, 0, 2))
    x2 = x.reshape(BH * W, C)

    w_bytes = ds * C * C * w_split.dtype.itemsize
    resident = (w_bytes if w_bytes > (4 << 20) else 2 * w_bytes) \
        + 4 * lane * (lane // c_out) * 4 + 4 * lane * 4
    tr = _pick_row_tile(BH, W, C, ds, x.dtype.itemsize, resident)
    grid = (BH // tr,)

    def build(dense):
        width = lane if dense else C
        gm, gb, g_d, b_d = _ln_constants(width, c_out, gamma, beta)
        if dense:
            out_shape = jax.ShapeDtypeStruct((BH, ds * lane), x.dtype)
            out_spec = pl.BlockSpec((tr, ds * lane), lambda i: (i, 0))
        else:
            out_shape = jax.ShapeDtypeStruct((BH, ds, W, C), x.dtype)
            out_spec = pl.BlockSpec((tr, ds, W, C), lambda i: (i, 0, 0, 0))
        # Constant index map -> single-buffer the resident weight when large.
        w_kw = {"pipeline_mode": pl.Buffered(1)} if w_bytes > (4 << 20) else {}
        fn = pl.pallas_call(
            functools.partial(_expand_norm_kernel, dense_minor_merge=dense),
            out_shape=out_shape,
            grid_spec=pltpu.PrefetchScalarGridSpec(
                num_scalar_prefetch=0,
                grid=grid,
                in_specs=[
                    pl.BlockSpec((tr * W, C), lambda i: (i, 0)),
                    pl.BlockSpec((ds, C, C), lambda i: (0, 0, 0), **w_kw),
                    pl.BlockSpec(gm.shape, lambda i: (0, 0)),
                    pl.BlockSpec(gb.shape, lambda i: (0, 0)),
                    pl.BlockSpec((1, width), lambda i: (0, 0)),
                    pl.BlockSpec((1, width), lambda i: (0, 0)),
                ],
                out_specs=out_spec),
            compiler_params=pltpu.CompilerParams(
                dimension_semantics=("parallel",),
                vmem_limit_bytes=48 * 1024 * 1024),
        )
        return fn(x2, w_split, gm, gb, g_d, b_d)

    try:
        out = build(dense=True)
    except Exception:
        # TODO(synk): drop once minor-dim-merging reshapes are universally
        # supported by Mosaic; this keeps the previously-proven (masked-store)
        # output layout, numerically identical.
        out = build(dense=False)

    # Memory order is (b, h, p1, w, p2, c) in both layouts -> merging/splitting
    # only adjacent dims, i.e. the rearrange comes out as a FREE reshape.
    return out.reshape(B, H * ds, W * ds, c_out)


def _reference(x, w_t, gamma, beta, dim_scale=2):
    B, H, W, C = x.shape
    c_out = C // dim_scale
    y = jnp.matmul(x, w_t, precision=lax.Precision.HIGHEST)      # (B,H,W,ds*C)
    y = y.reshape(B, H, W, dim_scale, dim_scale, c_out)
    y = jnp.transpose(y, (0, 1, 3, 2, 4, 5)).reshape(
        B, H * dim_scale, W * dim_scale, c_out)
    mu = jnp.mean(y, axis=-1, keepdims=True)
    var = jnp.mean((y - mu) ** 2, axis=-1, keepdims=True)
    return (y - mu) * lax.rsqrt(var + EPS) * gamma + beta


if __name__ == "__main__":
    # PatchExpand2D(dim=16): self.dim = C = 32, expand 32 -> 64, LayerNorm(16).
    dim = 16
    dim_scale = 2
    C = dim * 2
    B, H, W = 2, 8, 8
    c_out = C // dim_scale

    key = jax.random.PRNGKey(0)
    kx, kw, kg, kb = jax.random.split(key, 4)
    x = jax.random.normal(kx, (B, H, W, C), dtype=jnp.float32)
    # nn.Linear weight is (out, in); pass its transpose (in, out).
    w = jax.random.normal(kw, (dim_scale * C, C), dtype=jnp.float32) * 0.05
    w_t = w.T
    gamma = 1.0 + 0.1 * jax.random.normal(kg, (c_out,), dtype=jnp.float32)
    beta = 0.1 * jax.random.normal(kb, (c_out,), dtype=jnp.float32)

    out = patch_expand2d(x, w_t, gamma, beta, dim_scale=dim_scale)
    out = jax.block_until_ready(out)

    ref = _reference(x, w_t, gamma, beta, dim_scale=dim_scale)
    assert out.shape == (B, H * dim_scale, W * dim_scale, c_out), out.shape
    assert jnp.allclose(out, ref, atol=1e-4, rtol=1e-4), float(
        jnp.max(jnp.abs(out - ref)))
    print("KERNEL_OK")
</pallas_src>

<mosaic_0001>
module attributes {stable_mosaic.version = 11 : i64} {
  func.func @_expand_norm_kernel(%arg0: i32, %arg1: memref<64x32xf32, #tpu.memory_space<vmem>>, %arg2: memref<2x32x32xf32, #tpu.memory_space<vmem>>, %arg3: memref<256x16xf32, #tpu.memory_space<vmem>>, %arg4: memref<16x256xf32, #tpu.memory_space<vmem>>, %arg5: memref<1x256xf32, #tpu.memory_space<vmem>>, %arg6: memref<1x256xf32, #tpu.memory_space<vmem>>, %arg7: memref<8x512xf32, #tpu.memory_space<vmem>>) attributes {dimension_semantics = [#tpu.dimension_semantics<parallel>], iteration_bounds = array<i64: 2>, scalar_prefetch = 0 : i64, scratch_operands = 0 : i64, tpu.core_type = #tpu.core_type<tc>, window_params = [{transform_indices = @transform_0, window_bounds = array<i64: 64, 32>}, {pipeline_mode = #tpu.pipeline_mode<synchronous>, transform_indices = @transform_1, window_bounds = array<i64: 2, 32, 32>}, {pipeline_mode = #tpu.pipeline_mode<synchronous>, transform_indices = @transform_2, window_bounds = array<i64: 256, 16>}, {pipeline_mode = #tpu.pipeline_mode<synchronous>, transform_indices = @transform_3, window_bounds = array<i64: 16, 256>}, {pipeline_mode = #tpu.pipeline_mode<synchronous>, transform_indices = @transform_4, window_bounds = array<i64: 1, 256>}, {pipeline_mode = #tpu.pipeline_mode<synchronous>, transform_indices = @transform_5, window_bounds = array<i64: 1, 256>}, {transform_indices = @transform_6, window_bounds = array<i64: 8, 512>}]} {
    %c0 = arith.constant 0 : index
    %c0_0 = arith.constant 0 : index
    %0 = vector.load %arg1[%c0, %c0_0] : memref<64x32xf32, #tpu.memory_space<vmem>>, vector<64x32xf32>
    %c0_1 = arith.constant 0 : index
    %c0_2 = arith.constant 0 : index
    %1 = vector.load %arg3[%c0_1, %c0_2] : memref<256x16xf32, #tpu.memory_space<vmem>>, vector<256x16xf32>
    %c0_3 = arith.constant 0 : index
    %c0_4 = arith.constant 0 : index
    %2 = vector.load %arg4[%c0_3, %c0_4] : memref<16x256xf32, #tpu.memory_space<vmem>>, vector<16x256xf32>
    %c0_5 = arith.constant 0 : index
    %c0_6 = arith.constant 0 : index
    %3 = vector.load %arg5[%c0_5, %c0_6] : memref<1x256xf32, #tpu.memory_space<vmem>>, vector<1x256xf32>
    %c0_7 = arith.constant 0 : index
    %c0_8 = arith.constant 0 : index
    %4 = vector.load %arg6[%c0_7, %c0_8] : memref<1x256xf32, #tpu.memory_space<vmem>>, vector<1x256xf32>
    %c0_9 = arith.constant 0 : index
    %c0_10 = arith.constant 0 : index
    %c0_11 = arith.constant 0 : index
    %5 = vector.load %arg2[%c0_9, %c0_10, %c0_11] : memref<2x32x32xf32, #tpu.memory_space<vmem>>, vector<1x32x32xf32>
    %6 = vector.shape_cast %5 : vector<1x32x32xf32> to vector<32x32xf32>
    %cst = arith.constant dense<0.000000e+00> : vector<64x32xf32>
    %7 = tpu.matmul %0, %6, %cst {dimension_numbers = #tpu.dot_dimension_numbers<[1], [0], [0], [1], [0, 0, 1, 1], [], []>} : vector<64x32xf32>, vector<32x32xf32>, vector<64x32xf32> -> vector<64x32xf32>
    %8 = vector.shape_cast %7 : vector<64x32xf32> to vector<8x256xf32>
    %cst_12 = arith.constant dense<0.000000e+00> : vector<8x16xf32>
    %9 = tpu.matmul %8, %1, %cst_12 {dimension_numbers = #tpu.dot_dimension_numbers<[1], [0], [0], [1], [0, 0, 1, 1], [], []>} : vector<8x256xf32>, vector<256x16xf32>, vector<8x16xf32> -> vector<8x16xf32>
    %cst_13 = arith.constant dense<0.000000e+00> : vector<8x256xf32>
    %10 = tpu.matmul %9, %2, %cst_13 {dimension_numbers = #tpu.dot_dimension_numbers<[1], [0], [0], [1], [0, 0, 1, 1], [], []>} : vector<8x16xf32>, vector<16x256xf32>, vector<8x256xf32> -> vector<8x256xf32>
    %11 = arith.subf %8, %10 : vector<8x256xf32>
    %12 = arith.mulf %11, %11 : vector<8x256xf32>
    %cst_14 = arith.constant dense<0.000000e+00> : vector<8x16xf32>
    %13 = tpu.matmul %12, %1, %cst_14 {dimension_numbers = #tpu.dot_dimension_numbers<[1], [0], [0], [1], [0, 0, 1, 1], [], []>} : vector<8x256xf32>, vector<256x16xf32>, vector<8x16xf32> -> vector<8x16xf32>
    %cst_15 = arith.constant 9.99999974E-6 : f32
    %14 = vector.broadcast %cst_15 : f32 to vector<8x16xf32>
    %15 = arith.addf %13, %14 : vector<8x16xf32>
    %16 = math.rsqrt %15 : vector<8x16xf32>
    %cst_16 = arith.constant dense<0.000000e+00> : vector<8x256xf32>
    %17 = tpu.matmul %16, %2, %cst_16 {dimension_numbers = #tpu.dot_dimension_numbers<[1], [0], [0], [1], [0, 0, 1, 1], [], []>} : vector<8x16xf32>, vector<16x256xf32>, vector<8x256xf32> -> vector<8x256xf32>
    %18 = arith.mulf %11, %17 : vector<8x256xf32>
    %19 = vector.broadcast %3 : vector<1x256xf32> to vector<8x256xf32>
    %20 = arith.mulf %18, %19 : vector<8x256xf32>
    %21 = vector.broadcast %4 : vector<1x256xf32> to vector<8x256xf32>
    %22 = arith.addf %20, %21 : vector<8x256xf32>
    %c0_17 = arith.constant 0 : index
    %c0_18 = arith.constant 0 : index
    %23 = vector.load %arg7[%c0_17, %c0_18] : memref<8x512xf32, #tpu.memory_space<vmem>>, vector<8x256xf32>
    tpu.vector_store %arg7[%c0_17, %c0_18], %22 {strides = array<i32>} : memref<8x512xf32, #tpu.memory_space<vmem>>, vector<8x256xf32>,
    %c1 = arith.constant 1 : index
    %c0_19 = arith.constant 0 : index
    %c0_20 = arith.constant 0 : index
    %24 = vector.load %arg2[%c1, %c0_19, %c0_20] : memref<2x32x32xf32, #tpu.memory_space<vmem>>, vector<1x32x32xf32>
    %25 = vector.shape_cast %24 : vector<1x32x32xf32> to vector<32x32xf32>
    %cst_21 = arith.constant dense<0.000000e+00> : vector<64x32xf32>
    %26 = tpu.matmul %0, %25, %cst_21 {dimension_numbers = #tpu.dot_dimension_numbers<[1], [0], [0], [1], [0, 0, 1, 1], [], []>} : vector<64x32xf32>, vector<32x32xf32>, vector<64x32xf32> -> vector<64x32xf32>
    %27 = vector.shape_cast %26 : vector<64x32xf32> to vector<8x256xf32>
    %cst_22 = arith.constant dense<0.000000e+00> : vector<8x16xf32>
    %28 = tpu.matmul %27, %1, %cst_22 {dimension_numbers = #tpu.dot_dimension_numbers<[1], [0], [0], [1], [0, 0, 1, 1], [], []>} : vector<8x256xf32>, vector<256x16xf32>, vector<8x16xf32> -> vector<8x16xf32>
    %cst_23 = arith.constant dense<0.000000e+00> : vector<8x256xf32>
    %29 = tpu.matmul %28, %2, %cst_23 {dimension_numbers = #tpu.dot_dimension_numbers<[1], [0], [0], [1], [0, 0, 1, 1], [], []>} : vector<8x16xf32>, vector<16x256xf32>, vector<8x256xf32> -> vector<8x256xf32>
    %30 = arith.subf %27, %29 : vector<8x256xf32>
    %31 = arith.mulf %30, %30 : vector<8x256xf32>
    %cst_24 = arith.constant dense<0.000000e+00> : vector<8x16xf32>
    %32 = tpu.matmul %31, %1, %cst_24 {dimension_numbers = #tpu.dot_dimension_numbers<[1], [0], [0], [1], [0, 0, 1, 1], [], []>} : vector<8x256xf32>, vector<256x16xf32>, vector<8x16xf32> -> vector<8x16xf32>
    %cst_25 = arith.constant 9.99999974E-6 : f32
    %33 = vector.broadcast %cst_25 : f32 to vector<8x16xf32>
    %34 = arith.addf %32, %33 : vector<8x16xf32>
    %35 = math.rsqrt %34 : vector<8x16xf32>
    %cst_26 = arith.constant dense<0.000000e+00> : vector<8x256xf32>
    %36 = tpu.matmul %35, %2, %cst_26 {dimension_numbers = #tpu.dot_dimension_numbers<[1], [0], [0], [1], [0, 0, 1, 1], [], []>} : vector<8x16xf32>, vector<16x256xf32>, vector<8x256xf32> -> vector<8x256xf32>
    %37 = arith.mulf %30, %36 : vector<8x256xf32>
    %38 = vector.broadcast %3 : vector<1x256xf32> to vector<8x256xf32>
    %39 = arith.mulf %37, %38 : vector<8x256xf32>
    %40 = vector.broadcast %4 : vector<1x256xf32> to vector<8x256xf32>
    %41 = arith.addf %39, %40 : vector<8x256xf32>
    %c0_27 = arith.constant 0 : index
    %c256 = arith.constant 256 : index
    %42 = vector.load %arg7[%c0_27, %c256] : memref<8x512xf32, #tpu.memory_space<vmem>>, vector<8x256xf32>
    tpu.vector_store %arg7[%c0_27, %c256], %41 {strides = array<i32>} : memref<8x512xf32, #tpu.memory_space<vmem>>, vector<8x256xf32>,
    return
  }
  func.func @transform_0(%arg0: i32) -> (i32, i32) {
    %c0_i32 = arith.constant 0 : i32
    %c0_i32_0 = arith.constant 0 : i32
    return %arg0, %c0_i32 : i32, i32
  }
  func.func @transform_1(%arg0: i32) -> (i32, i32, i32) {
    %c0_i32 = arith.constant 0 : i32
    %c0_i32_0 = arith.constant 0 : i32
    %c0_i32_1 = arith.constant 0 : i32
    %c0_i32_2 = arith.constant 0 : i32
    return %c0_i32, %c0_i32_0, %c0_i32_1 : i32, i32, i32
  }
  func.func @transform_2(%arg0: i32) -> (i32, i32) {
    %c0_i32 = arith.constant 0 : i32
    %c0_i32_0 = arith.constant 0 : i32
    %c0_i32_1 = arith.constant 0 : i32
    return %c0_i32, %c0_i32_0 : i32, i32
  }
  func.func @transform_3(%arg0: i32) -> (i32, i32) {
    %c0_i32 = arith.constant 0 : i32
    %c0_i32_0 = arith.constant 0 : i32
    %c0_i32_1 = arith.constant 0 : i32
    return %c0_i32, %c0_i32_0 : i32, i32
  }
  func.func @transform_4(%arg0: i32) -> (i32, i32) {
    %c0_i32 = arith.constant 0 : i32
    %c0_i32_0 = arith.constant 0 : i32
    %c0_i32_1 = arith.constant 0 : i32
    return %c0_i32, %c0_i32_0 : i32, i32
  }
  func.func @transform_5(%arg0: i32) -> (i32, i32) {
    %c0_i32 = arith.constant 0 : i32
    %c0_i32_0 = arith.constant 0 : i32
    %c0_i32_1 = arith.constant 0 : i32
    return %c0_i32, %c0_i32_0 : i32, i32
  }
  func.func @transform_6(%arg0: i32) -> (i32, i32) {
    %c0_i32 = arith.constant 0 : i32
    %c0_i32_0 = arith.constant 0 : i32
    return %arg0, %c0_i32 : i32, i32
  }
}

module attributes {stable_mosaic.version = 11 : i64} {
  func.func @_expand_norm_kernel(%arg0: i32, %arg1: memref<64x32xf32, #tpu.memory_space<vmem>>, %arg2: memref<2x32x32xf32, #tpu.memory_space<vmem>>, %arg3: memref<32x2xf32, #tpu.memory_space<vmem>>, %arg4: memref<2x32xf32, #tpu.memory_space<vmem>>, %arg5: memref<1x32xf32, #tpu.memory_space<vmem>>, %arg6: memref<1x32xf32, #tpu.memory_space<vmem>>, %arg7: memref<8x2x8x32xf32, #tpu.memory_space<vmem>>) attributes {dimension_semantics = [#tpu.dimension_semantics<parallel>], iteration_bounds = array<i64: 2>, scalar_prefetch = 0 : i64, scratch_operands = 0 : i64, tpu.core_type = #tpu.core_type<tc>, window_params = [{transform_indices = @transform_0, window_bounds = array<i64: 64, 32>}, {pipeline_mode = #tpu.pipeline_mode<synchronous>, transform_indices = @transform_1, window_bounds = array<i64: 2, 32, 32>}, {pipeline_mode = #tpu.pipeline_mode<synchronous>, transform_indices = @transform_2, window_bounds = array<i64: 32, 2>}, {pipeline_mode = #tpu.pipeline_mode<synchronous>, transform_indices = @transform_3, window_bounds = array<i64: 2, 32>}, {pipeline_mode = #tpu.pipeline_mode<synchronous>, transform_indices = @transform_4, window_bounds = array<i64: 1, 32>}, {pipeline_mode = #tpu.pipeline_mode<synchronous>, transform_indices = @transform_5, window_bounds = array<i64: 1, 32>}, {transform_indices = @transform_6, window_bounds = array<i64: 8, 2, 8, 32>}]} {
    %c0 = arith.constant 0 : index
    %c0_0 = arith.constant 0 : index
    %0 = vector.load %arg1[%c0, %c0_0] : memref<64x32xf32, #tpu.memory_space<vmem>>, vector<64x32xf32>
    %c0_1 = arith.constant 0 : index
    %c0_2 = arith.constant 0 : index
    %1 = vector.load %arg3[%c0_1, %c0_2] : memref<32x2xf32, #tpu.memory_space<vmem>>, vector<32x2xf32>
    %c0_3 = arith.constant 0 : index
    %c0_4 = arith.constant 0 : index
    %2 = vector.load %arg4[%c0_3, %c0_4] : memref<2x32xf32, #tpu.memory_space<vmem>>, vector<2x32xf32>
    %c0_5 = arith.constant 0 : index
    %c0_6 = arith.constant 0 : index
    %3 = vector.load %arg5[%c0_5, %c0_6] : memref<1x32xf32, #tpu.memory_space<vmem>>, vector<1x32xf32>
    %c0_7 = arith.constant 0 : index
    %c0_8 = arith.constant 0 : index
    %4 = vector.load %arg6[%c0_7, %c0_8] : memref<1x32xf32, #tpu.memory_space<vmem>>, vector<1x32xf32>
    %c0_9 = arith.constant 0 : index
    %c0_10 = arith.constant 0 : index
    %c0_11 = arith.constant 0 : index
    %5 = vector.load %arg2[%c0_9, %c0_10, %c0_11] : memref<2x32x32xf32, #tpu.memory_space<vmem>>, vector<1x32x32xf32>
    %6 = vector.shape_cast %5 : vector<1x32x32xf32> to vector<32x32xf32>
    %cst = arith.constant dense<0.000000e+00> : vector<64x32xf32>
    %7 = tpu.matmul %0, %6, %cst {dimension_numbers = #tpu.dot_dimension_numbers<[1], [0], [0], [1], [0, 0, 1, 1], [], []>} : vector<64x32xf32>, vector<32x32xf32>, vector<64x32xf32> -> vector<64x32xf32>
    %cst_12 = arith.constant dense<0.000000e+00> : vector<64x2xf32>
    %8 = tpu.matmul %7, %1, %cst_12 {dimension_numbers = #tpu.dot_dimension_numbers<[1], [0], [0], [1], [0, 0, 1, 1], [], []>} : vector<64x32xf32>, vector<32x2xf32>, vector<64x2xf32> -> vector<64x2xf32>
    %cst_13 = arith.constant dense<0.000000e+00> : vector<64x32xf32>
    %9 = tpu.matmul %8, %2, %cst_13 {dimension_numbers = #tpu.dot_dimension_numbers<[1], [0], [0], [1], [0, 0, 1, 1], [], []>} : vector<64x2xf32>, vector<2x32xf32>, vector<64x32xf32> -> vector<64x32xf32>
    %10 = arith.subf %7, %9 : vector<64x32xf32>
    %11 = arith.mulf %10, %10 : vector<64x32xf32>
    %cst_14 = arith.constant dense<0.000000e+00> : vector<64x2xf32>
    %12 = tpu.matmul %11, %1, %cst_14 {dimension_numbers = #tpu.dot_dimension_numbers<[1], [0], [0], [1], [0, 0, 1, 1], [], []>} : vector<64x32xf32>, vector<32x2xf32>, vector<64x2xf32> -> vector<64x2xf32>
    %cst_15 = arith.constant 9.99999974E-6 : f32
    %13 = vector.broadcast %cst_15 : f32 to vector<64x2xf32>
    %14 = arith.addf %12, %13 : vector<64x2xf32>
    %15 = math.rsqrt %14 : vector<64x2xf32>
    %cst_16 = arith.constant dense<0.000000e+00> : vector<64x32xf32>
    %16 = tpu.matmul %15, %2, %cst_16 {dimension_numbers = #tpu.dot_dimension_numbers<[1], [0], [0], [1], [0, 0, 1, 1], [], []>} : vector<64x2xf32>, vector<2x32xf32>, vector<64x32xf32> -> vector<64x32xf32>
    %17 = arith.mulf %10, %16 : vector<64x32xf32>
    %18 = vector.broadcast %3 : vector<1x32xf32> to vector<64x32xf32>
    %19 = arith.mulf %17, %18 : vector<64x32xf32>
    %20 = vector.broadcast %4 : vector<1x32xf32> to vector<64x32xf32>
    %21 = arith.addf %19, %20 : vector<64x32xf32>
    %22 = vector.shape_cast %21 : vector<64x32xf32> to vector<8x8x32xf32>
    %c0_17 = arith.constant 0 : index
    %c0_18 = arith.constant 0 : index
    %c0_19 = arith.constant 0 : index
    %c0_20 = arith.constant 0 : index
    %23 = vector.load %arg7[%c0_17, %c0_18, %c0_19, %c0_20] : memref<8x2x8x32xf32, #tpu.memory_space<vmem>>, vector<8x1x8x32xf32>
    %24 = vector.shape_cast %23 : vector<8x1x8x32xf32> to vector<8x8x32xf32>
    %25 = vector.shape_cast %22 : vector<8x8x32xf32> to vector<8x1x8x32xf32>
    tpu.vector_store %arg7[%c0_17, %c0_18, %c0_19, %c0_20], %25 {strides = array<i32>} : memref<8x2x8x32xf32, #tpu.memory_space<vmem>>, vector<8x1x8x32xf32>,
    %c1 = arith.constant 1 : index
    %c0_21 = arith.constant 0 : index
    %c0_22 = arith.constant 0 : index
    %26 = vector.load %arg2[%c1, %c0_21, %c0_22] : memref<2x32x32xf32, #tpu.memory_space<vmem>>, vector<1x32x32xf32>
    %27 = vector.shape_cast %26 : vector<1x32x32xf32> to vector<32x32xf32>
    %cst_23 = arith.constant dense<0.000000e+00> : vector<64x32xf32>
    %28 = tpu.matmul %0, %27, %cst_23 {dimension_numbers = #tpu.dot_dimension_numbers<[1], [0], [0], [1], [0, 0, 1, 1], [], []>} : vector<64x32xf32>, vector<32x32xf32>, vector<64x32xf32> -> vector<64x32xf32>
    %cst_24 = arith.constant dense<0.000000e+00> : vector<64x2xf32>
    %29 = tpu.matmul %28, %1, %cst_24 {dimension_numbers = #tpu.dot_dimension_numbers<[1], [0], [0], [1], [0, 0, 1, 1], [], []>} : vector<64x32xf32>, vector<32x2xf32>, vector<64x2xf32> -> vector<64x2xf32>
    %cst_25 = arith.constant dense<0.000000e+00> : vector<64x32xf32>
    %30 = tpu.matmul %29, %2, %cst_25 {dimension_numbers = #tpu.dot_dimension_numbers<[1], [0], [0], [1], [0, 0, 1, 1], [], []>} : vector<64x2xf32>, vector<2x32xf32>, vector<64x32xf32> -> vector<64x32xf32>
    %31 = arith.subf %28, %30 : vector<64x32xf32>
    %32 = arith.mulf %31, %31 : vector<64x32xf32>
    %cst_26 = arith.constant dense<0.000000e+00> : vector<64x2xf32>
    %33 = tpu.matmul %32, %1, %cst_26 {dimension_numbers = #tpu.dot_dimension_numbers<[1], [0], [0], [1], [0, 0, 1, 1], [], []>} : vector<64x32xf32>, vector<32x2xf32>, vector<64x2xf32> -> vector<64x2xf32>
    %cst_27 = arith.constant 9.99999974E-6 : f32
    %34 = vector.broadcast %cst_27 : f32 to vector<64x2xf32>
    %35 = arith.addf %33, %34 : vector<64x2xf32>
    %36 = math.rsqrt %35 : vector<64x2xf32>
    %cst_28 = arith.constant dense<0.000000e+00> : vector<64x32xf32>
    %37 = tpu.matmul %36, %2, %cst_28 {dimension_numbers = #tpu.dot_dimension_numbers<[1], [0], [0], [1], [0, 0, 1, 1], [], []>} : vector<64x2xf32>, vector<2x32xf32>, vector<64x32xf32> -> vector<64x32xf32>
    %38 = arith.mulf %31, %37 : vector<64x32xf32>
    %39 = vector.broadcast %3 : vector<1x32xf32> to vector<64x32xf32>
    %40 = arith.mulf %38, %39 : vector<64x32xf32>
    %41 = vector.broadcast %4 : vector<1x32xf32> to vector<64x32xf32>
    %42 = arith.addf %40, %41 : vector<64x32xf32>
    %43 = vector.shape_cast %42 : vector<64x32xf32> to vector<8x8x32xf32>
    %c0_29 = arith.constant 0 : index
    %c1_30 = arith.constant 1 : index
    %c0_31 = arith.constant 0 : index
    %c0_32 = arith.constant 0 : index
    %44 = vector.load %arg7[%c0_29, %c1_30, %c0_31, %c0_32] : memref<8x2x8x32xf32, #tpu.memory_space<vmem>>, vector<8x1x8x32xf32>
    %45 = vector.shape_cast %44 : vector<8x1x8x32xf32> to vector<8x8x32xf32>
    %46 = vector.shape_cast %43 : vector<8x8x32xf32> to vector<8x1x8x32xf32>
    tpu.vector_store %arg7[%c0_29, %c1_30, %c0_31, %c0_32], %46 {strides = array<i32>} : memref<8x2x8x32xf32, #tpu.memory_space<vmem>>, vector<8x1x8x32xf32>,
    return
  }
  func.func @transform_0(%arg0: i32) -> (i32, i32) {
    %c0_i32 = arith.constant 0 : i32
    %c0_i32_0 = arith.constant 0 : i32
    return %arg0, %c0_i32 : i32, i32
  }
  func.func @transform_1(%arg0: i32) -> (i32, i32, i32) {
    %c0_i32 = arith.constant 0 : i32
    %c0_i32_0 = arith.constant 0 : i32
    %c0_i32_1 = arith.constant 0 : i32
    %c0_i32_2 = arith.constant 0 : i32
    return %c0_i32, %c0_i32_0, %c0_i32_1 : i32, i32, i32
  }
  func.func @transform_2(%arg0: i32) -> (i32, i32) {
    %c0_i32 = arith.constant 0 : i32
    %c0_i32_0 = arith.constant 0 : i32
    %c0_i32_1 = arith.constant 0 : i32
    return %c0_i32, %c0_i32_0 : i32, i32
  }
  func.func @transform_3(%arg0: i32) -> (i32, i32) {
    %c0_i32 = arith.constant 0 : i32
    %c0_i32_0 = arith.constant 0 : i32
    %c0_i32_1 = arith.constant 0 : i32
    return %c0_i32, %c0_i32_0 : i32, i32
  }
  func.func @transform_4(%arg0: i32) -> (i32, i32) {
    %c0_i32 = arith.constant 0 : i32
    %c0_i32_0 = arith.constant 0 : i32
    %c0_i32_1 = arith.constant 0 : i32
    return %c0_i32, %c0_i32_0 : i32, i32
  }
  func.func @transform_5(%arg0: i32) -> (i32, i32) {
    %c0_i32 = arith.constant 0 : i32
    %c0_i32_0 = arith.constant 0 : i32
    %c0_i32_1 = arith.constant 0 : i32
    return %c0_i32, %c0_i32_0 : i32, i32
  }
  func.func @transform_6(%arg0: i32) -> (i32, i32, i32, i32) {
    %c0_i32 = arith.constant 0 : i32
    %c0_i32_0 = arith.constant 0 : i32
    %c0_i32_1 = arith.constant 0 : i32
    %c0_i32_2 = arith.constant 0 : i32
    return %arg0, %c0_i32, %c0_i32_0, %c0_i32_1 : i32, i32, i32, i32
  }
}

</mosaic_0001>

<bundles_post_ra>
// kernel: tpu_custom_call.1
= control target key start
LH: loop header
LB: loop body
LE: loop exit
PB: predicated region body
PF: predicated region fallthrough
CT: control target
= control target key end

     0   :  { %11 = vsyncpa [#allocation3], 0  ;;  %s2000_s0 = inlined_call_operand.vmem [shape: f32[128,32], index: 0, kind: input, shape index: {}]   ;;  %s2001_s1 = inlined_call_operand.vmem [shape: f32[2,32,32], index: 1, kind: input, shape index: {}]   ;;  %s2002_s2 = inlined_call_operand.vmem [shape: f32[32,2], index: 2, kind: input, shape index: {}]   ;;  %s2003_s3 = inlined_call_operand.vmem [shape: f32[2,32], index: 3, kind: input, shape index: {}]   ;;  %s2004_s4 = inlined_call_operand.vmem [shape: f32[1,32], index: 4, kind: input, shape index: {}]   ;;  %s2005_s5 = inlined_call_operand.vmem [shape: f32[1,32], index: 5, kind: input, shape index: {}]   ;;  %s2006_s6 = inlined_call_operand.hbm [shape: f32[16,2,8,32], index: 6, kind: output, shape index: {}]  }
   0x1   :  { %13 = vsyncpa [#allocation3 + $0x1], 0  ;;  %s1543_s21 = smov 0   ;;  %s1545_s22 = smov 0  }
   0x2   :  { %s1547_s23 = smov 0   ;;  %s1549_s24 = smov 0  }
   0x3 LB: > { %s1564_s25 = sadd.s32 4294967295, %s1504_s24   ;;  %s1251_s26 = sadd.s32 4294967294, %s1504_s24   ;;  %s1504_s24 = sphi %s1549_s24, %s2012_s24   ;;  %s1500_s23 = sphi %s1547_s23, %s2011_s23   ;;  %s1496_s22 = sphi %s1545_s22, %s2010_s22   ;;  %s1492_s21 = sphi %s1543_s21, %s2009_s21  }
   0x4   : > { %s1568_s27 = sadd.s32 1, %s1504_s24   ;;  %s157_s28 = sadd.s32 1, %s1500_s23 }
   0x5   : > { %s154_s29 = ssub.s32 %s1504_s24, %s1568_s27  ;;  %p167_p0 = scmp.ne.s32.totalorder %s1500_s23, %s1496_s22 }
   0x6   : > { %p155_p1 = scmp.eq.s32.totalorder %s154_s29, 0  ;;  %p168_p2 = scmp.eq.s32.totalorder %s1564_s25, 1 }
   0x7   : > { %p173_p3 = scmp.ne.s32.totalorder %s1496_s22, %s1492_s21  ;;  %p174_p4 = scmp.eq.s32.totalorder %s1251_s26, 1 }
   0x8   : > { %s1579_s30 = scalar_select %p155_p1, %s1500_s23, %s157_s28  }
   0x9   : > { %p1581_p5 = por %p168_p2, %p167_p0  ;;  %p1585_p6 = por %p174_p4, %p173_p3 }
   0xa   : > { %p1254_p7 = scmp.ge.s32.totalorder %s1504_s24, 1  ;;  %p216_p8 = scmp.lt.s32.totalorder %s1504_s24, 3 }
   0xc   : > { %p217_p9 = pnand %p1254_p7, %p216_p8 }
   0xd   : > { %s1256_s13 = sshll.u32 (!%p217_p9), %s1564_s25, 3  ;;  %s243_s10 = sand.u32 (!%p217_p9), 1, %s1496_s22  }
   0xe   : > { %220 = sbr.rel (%p217_p9) target bundleno = 975 (0x3cf), region = 44  ;;  %p247_p10 = scmp.lt.s32.totalorder (!%p217_p9), %s1256_s13, 15 }
   0xf   : > { %s1361_s17 = sshll.u32 (!%p217_p9), %s1564_s25, 7  ;;  %s1173_s25 = scalar_lea.sflag (!%p217_p9), [#allocation3], %s243_s10 }
  0x10   : > { %s1185_s20 = scalar_lea.hbm (!%p217_p9), %s2006_s6, %s1361_s17 }
  0x11   : > { %s1188_s28 = sshll.u32 (!%p217_p9), %s1185_s20, 4  ;;  %s1189_s28 = int_to_ptr.hbm [resolvable:$true] %s1188_s28 }
  0x13   : > { %v271_v0 = vld [vmem:[%s2001_s1 + $0x18] sm:$0xff]  ;;  %v270_v1 = vld [vmem:[%s2001_s1 + $0x10] sm:$0xff]  ;;  %v269_v2 = vld [vmem:[%s2001_s1 + $0x8] sm:$0xff]  ;;  %s2014_s13 = smov (!%p247_p10, %s1256_s13), 15  ;;  %vm272_vm0 = vcmask 261120   ;;  %vm428_vm1 = vcmask 1041408  }
  0x14   : > { %309 = vmatpush.msra.mxu0 %v271_v0  ;;  %1362 = vmatpush.msra.mxu1 %v271_v0  ;;  %v268_v3 = vld [vmem:[%s2001_s1] sm:$0xff]  ;;  %s1257_s18 = sshll.u32 %s2014_s13, 3  ;;  %v1607_v4 = vld [vmem:[%s2002_s2 + $0x18] sm:$0xff]  ;;  %v1615_v6 = vld [vmem:[%s2002_s2 + $0x10] sm:$0xff]  ;;  %vm403_vm2 = vcmask 15360   ;;  %s1255_s13 = sshll.u32 %s243_s10, 7 }
  0x15   : > { %s250_s29 = scalar_lea.vmem %s2000_s0, %s1257_s18  ;;  %v1623_v8 = vld [vmem:[%s2002_s2 + $0x8] sm:$0xff]  ;;  %v1629_v9 = vld [vmem:[%s2002_s2] sm:$0xff]  ;;  %v1303_v21 = vld [vmem:[%s2001_s1 + $0x38] sm:$0xff]  ;;  %s1879_s16 = scalar_lea.vmem [#allocation2], %s1255_s13 }
  0x16   : > { %310 = vmatpush.msra.mxu0 %v270_v1  ;;  %1363 = vmatpush.msra.mxu1 %v270_v1  ;;  %v253_v5 = vld [vmem:[%s250_s29] sm:$0xff]  ;;  %v254_v10 = vld [vmem:[%s250_s29 + $0x8] sm:$0xff]  ;;  %v255_v12 = vld [vmem:[%s250_s29 + $0x10] sm:$0xff]  ;;  %s1186_s26 = sshll.u32 %s1879_s16, 4  ;;  %s1462_s13 = scalar_lea.hbm %s2006_s6, 256  ;;  %s1187_s26 = int_to_ptr.vmem [resolvable:$true] %s1186_s26 }
  0x17   : > { %v257_v7 = vld [vmem:[%s250_s29 + $0x20] sm:$0xff]  ;;  %v258_v11 = vld [vmem:[%s250_s29 + $0x28] sm:$0xff]  ;;  %v259_v13 = vld [vmem:[%s250_s29 + $0x30] sm:$0xff] }
  0x18   : > { %311 = vmatpush.msra.mxu0 %v269_v2  ;;  %1364 = vmatpush.msra.mxu1 %v269_v2  ;;  %v256_v14 = vld [vmem:[%s250_s29 + $0x18] sm:$0xff]  ;;  %v1302_v22 = vld [vmem:[%s2001_s1 + $0x30] sm:$0xff]  ;;  %v1301_v23 = vld [vmem:[%s2001_s1 + $0x28] sm:$0xff] }
  0x19   : > { %v260_v15 = vld [vmem:[%s250_s29 + $0x38] sm:$0xff]  ;;  %v1300_v24 = vld [vmem:[%s2001_s1 + $0x20] sm:$0xff]  ;;  %s1456_s29 = sshra.s32 %s1189_s28, 4  ;;  %s1457_s29 = int_to_ptr.hbm [resolvable:$true] %s1456_s29 }
  0x1a   : > { %312 = vmatpush.msra.mxu0 %v268_v3  ;;  %1365 = vmatpush.msra.mxu1 %v268_v3  ;;  %v265_v28 = vld [vmem:[%s2003_s3] sm:$0x3]  ;;  %s1458_s9 = scalar_lea.hbm %s1457_s29, 128  ;;  %p1463_p0 = scmp.lt.s32.totalorder %s1457_s29, %s2006_s6 }
  0x1b   : > { %1258 = vmatmul.msk.f32.vlgmr.msra.gmra.mxu0 %vm272_vm0, %v253_v5  ;;  %1262 = vmatmul.msk.f32.vlgmr.msra.gmra.mxu1 %vm272_vm0, %v257_v7  ;;  %p1459_p11 = scmp.ne.s32.totalorder %s1457_s29, %s1458_s9  ;;  %p1464_p1 = scmp.lt.s32.totalorder %s1462_s13, %s1458_s9 }
  0x1c   : > { %374 = vmatpush.msrb.mxu1 %v1607_v4  ;;  %754 = vmatpush.msrb.mxu0 %v1303_v21 }
  0x1d   : > { %1274 = vmatpush.msk.msra.mxu2 %vm428_vm1, %v265_v28  ;;  %1366 = vmatpush.msk.msra.mxu3 %vm428_vm1, %v265_v28  ;;  %p1460_p12 = pnand %p1459_p11, %p1581_p5  ;;  %p1465_p2 = por %p1464_p1, %p1463_p0 }
  0x1e   : > { %375 = vmatpush.msrb.mxu1 %v1615_v6  ;;  %755 = vmatpush.msrb.mxu0 %v1302_v22 }
  0x1f   : > { %525 = vmatpush.msrb.mxu3 %v1607_v4  ;;  %1291 = vmatpush.msk.msrb.mxu2 %vm428_vm1, %v265_v28  ;;  %p1461_p13 = pneg %p1460_p12 }
  0x20   : > { %376 = vmatpush.msrb.mxu1 %v1623_v8  ;;  %756 = vmatpush.msrb.mxu0 %v1301_v23 }
  0x21   : > { %526 = vmatpush.msrb.mxu3 %v1615_v6  ;;  %p1466_p3 = pnand %p1465_p2, %p1461_p13 }
  0x22   : > { %377 = vmatpush.msrb.mxu1 %v1629_v9  ;;  %757 = vmatpush.msrb.mxu0 %v1300_v24 }
  0x23   : > { %1259 = vmatmul.msk.f32.gmra.mxu0 %vm272_vm0, %v254_v10  ;;  %1263 = vmatmul.msk.f32.gmra.mxu1 %vm272_vm0, %v258_v11 }
  0x24   : > { %819 = vmatpush.msra.mxu1 %v1607_v4  ;;  %1337 = vmatpush.msk.msra.mxu0 %vm428_vm1, %v265_v28 }
  0x25   : > { %527 = vmatpush.msrb.mxu3 %v1623_v8 }
  0x26   : > { %820 = vmatpush.msra.mxu1 %v1615_v6 }
  0x27   : > { %528 = vmatpush.msrb.mxu3 %v1629_v9 }
  0x28   : > { %821 = vmatpush.msra.mxu1 %v1623_v8 }
  0x2a   : > { %822 = vmatpush.msra.mxu1 %v1629_v9 }
  0x2b   : > { %1260 = vmatmul.msk.f32.gmra.mxu0 %vm272_vm0, %v255_v12  ;;  %1264 = vmatmul.msk.f32.gmra.mxu1 %vm272_vm0, %v259_v13 }
  0x33   : > { %1261 = vmatmul.msk.f32.gmra.mxu0 %vm272_vm0, %v256_v14  ;;  %1265 = vmatmul.msk.f32.gmra.mxu1 %vm272_vm0, %v260_v15 }
  0x3b   : > { %1304 = vmatmul.msk.f32.vlgmr.msrb.gmra.mxu0 %vm272_vm0, %v253_v5 }
  0x43   : > { %1305 = vmatmul.msk.f32.gmra.mxu0 %vm272_vm0, %v254_v10 }
  0x4b   : > { %1306 = vmatmul.msk.f32.gmra.mxu0 %vm272_vm0, %v255_v12 }
  0x53   : > { %1307 = vmatmul.msk.f32.gmra.mxu0 %vm272_vm0, %v256_v14 }
  0x5b   : > { %1308 = vmatmul.msk.f32.gmra.mxu0 %vm272_vm0, %v257_v7 }
  0x63   : > { %1309 = vmatmul.msk.f32.gmra.mxu0 %vm272_vm0, %v258_v11 }
  0x6b   : > { %1310 = vmatmul.msk.f32.gmra.mxu0 %vm272_vm0, %v259_v13 }
  0x73   : > { %1311 = vmatmul.msk.f32.gmra.mxu0 %vm272_vm0, %v260_v15 }
  0x98   : > { %v1643_v16 = vpop.f32.mrf.mxu0  ;;  %v1657_v20 = vpop.f32.mrf.mxu1 }
  0x99   : > { %1266 = vmatmul.msk.f32.vlgmr.msrb.gmra.mxu1 %vm272_vm0, %v1643_v16 }
  0xa0   : > { %v1647_v17 = vpop.f32.mrf.mxu0  ;;  %v1676_v25 = vpop.f32.mrf.mxu1 }
  0xa1   : > { %1267 = vmatmul.msk.f32.gmra.mxu1 %vm272_vm0, %v1647_v17 }
  0xa8   : > { %v1651_v18 = vpop.f32.mrf.mxu0  ;;  %v1681_v26 = vpop.f32.mrf.mxu1 }
  0xa9   : > { %1268 = vmatmul.msk.f32.gmra.mxu1 %vm272_vm0, %v1651_v18 }
  0xb0   : > { %v1655_v19 = vpop.f32.mrf.mxu0  ;;  %v1686_v27 = vpop.f32.mrf.mxu1 }
  0xb1   : > { %1269 = vmatmul.msk.f32.gmra.mxu1 %vm272_vm0, %v1655_v19 }
  0xb8   : > { %v1714_v34 = vpop.f32.mrf.mxu0 }
  0xb9   : > { %1270 = vmatmul.msk.f32.gmra.mxu1 %vm272_vm0, %v1657_v20 }
  0xc0   : > { %v1719_v36 = vpop.f32.mrf.mxu0 }
  0xc1   : > { %1271 = vmatmul.msk.f32.gmra.mxu1 %vm272_vm0, %v1676_v25 }
  0xc8   : > { %v1725_v38 = vpop.f32.mrf.mxu0 }
  0xc9   : > { %1272 = vmatmul.msk.f32.gmra.mxu1 %vm272_vm0, %v1681_v26 }
  0xd0   : > { %v1730_v40 = vpop.f32.mrf.mxu0 }
  0xd1   : > { %1273 = vmatmul.msk.f32.gmra.mxu1 %vm272_vm0, %v1686_v27 }
  0xd8   : > { %v1735_v41 = vpop.f32.mrf.mxu0 }
  0xd9   : > { %1312 = vmatmul.msk.f32.vlgmr.msra.gmra.mxu1 %vm272_vm0, %v1714_v34 }
  0xe0   : > { %v1739_v42 = vpop.f32.mrf.mxu0 }
  0xe1   : > { %1313 = vmatmul.msk.f32.gmra.mxu1 %vm272_vm0, %v1719_v36 }
  0xe8   : > { %v1743_v43 = vpop.f32.mrf.mxu0 }
  0xe9   : > { %1314 = vmatmul.msk.f32.gmra.mxu1 %vm272_vm0, %v1725_v38 }
  0xf0   : > { %v1747_v44 = vpop.f32.mrf.mxu0 }
  0xf1   : > { %1315 = vmatmul.msk.f32.gmra.mxu1 %vm272_vm0, %v1730_v40 }
  0xf9   : > { %1316 = vmatmul.msk.f32.gmra.mxu1 %vm272_vm0, %v1735_v41 }
 0x101   : > { %1317 = vmatmul.msk.f32.gmra.mxu1 %vm272_vm0, %v1739_v42 }
 0x109   : > { %1318 = vmatmul.msk.f32.gmra.mxu1 %vm272_vm0, %v1743_v43 }
 0x111   : > { %1319 = vmatmul.msk.f32.gmra.mxu1 %vm272_vm0, %v1747_v44 }
 0x116   : > { %v379_v29 = vpop.f32.mrf.mxu1 }
 0x117   : > { %1275 = vmatmul.msk.f32.vlgmr.msra.gmra.mxu2 %vm403_vm2, %v379_v29 }
 0x118   : > { %965 = vmatpush.msra.mxu2 %v1607_v4 }
 0x11a   : > { %966 = vmatpush.msra.mxu2 %v1615_v6 }
 0x11c   : > { %967 = vmatpush.msra.mxu2 %v1623_v8 }
 0x11e   : > { %v382_v30 = vpop.f32.mrf.mxu1  ;;  %968 = vmatpush.msra.mxu2 %v1629_v9 }
 0x11f   : > { %1276 = vmatmul.msk.f32.gmra.mxu2 %vm403_vm2, %v382_v30 }
 0x126   : > { %v385_v31 = vpop.f32.mrf.mxu1 }
 0x127   : > { %1277 = vmatmul.msk.f32.gmra.mxu2 %vm403_vm2, %v385_v31 }
 0x12e   : > { %v388_v32 = vpop.f32.mrf.mxu1 }
 0x12f   : > { %1278 = vmatmul.msk.f32.gmra.mxu2 %vm403_vm2, %v388_v32 }
 0x136   : > { %v391_v33 = vpop.f32.mrf.mxu1 }
 0x137   : > { %1279 = vmatmul.msk.f32.gmra.mxu2 %vm403_vm2, %v391_v33 }
 0x13e   : > { %v394_v35 = vpop.f32.mrf.mxu1 }
 0x13f   : > { %1280 = vmatmul.msk.f32.vlgmr.msra.gmra.mxu3 %vm403_vm2, %v394_v35 }
 0x140   : > { %1320 = vmatpush.msk.msra.mxu3 %vm428_vm1, %v265_v28 }
 0x146   : > { %v397_v37 = vpop.f32.mrf.mxu1 }
 0x147   : > { %1281 = vmatmul.msk.f32.gmra.mxu3 %vm403_vm2, %v397_v37 }
 0x14e   : > { %v400_v39 = vpop.f32.mrf.mxu1 }
 0x14f   : > { %1282 = vmatmul.msk.f32.gmra.mxu3 %vm403_vm2, %v400_v39 }
 0x156   : > { %v824_v2 = vpop.f32.mrf.mxu1 }
 0x15e   : > { %v827_v6 = vpop.f32.mrf.mxu1 }
 0x166   : > { %v830_v7 = vpop.f32.mrf.mxu1 }
 0x16e   : > { %v833_v8 = vpop.f32.mrf.mxu1 }
 0x176   : > { %v836_v9 = vpop.f32.mrf.mxu1 }
 0x17e   : > { %v839_v10 = vpop.f32.mrf.mxu1 }
 0x186   : > { %v842_v11 = vpop.f32.mrf.mxu1 }
 0x18e   : > { %v845_v12 = vpop.f32.mrf.mxu1 }
 0x19a   : > { %v449_v45 = vpop.f32.mrf.mxu2 }
 0x19b   : > { %v1752_v46 = vsub.f32 %v1643_v16, %v449_v45 }
 0x19d   : > { %v481_v47 = vmul.f32 %v1752_v46, %v1752_v46 }
 0x19f   : > { %1283 = vmatmul.msk.f32.vlgmr.msrb.gmra.mxu3 %vm272_vm0, %v481_v47 }
 0x1a2   : > { %v452_v48 = vpop.f32.mrf.mxu2 }
 0x1a3   : > { %v1758_v49 = vsub.f32 %v1647_v17, %v452_v48 }
 0x1a5   : > { %v482_v50 = vmul.f32 %v1758_v49, %v1758_v49 }
 0x1a7   : > { %1284 = vmatmul.msk.f32.gmra.mxu3 %vm272_vm0, %v482_v50 }
 0x1aa   : > { %v455_v51 = vpop.f32.mrf.mxu2 }
 0x1ab   : > { %v1764_v52 = vsub.f32 %v1651_v18, %v455_v51 }
 0x1ad   : > { %v483_v53 = vmul.f32 %v1764_v52, %v1764_v52 }
 0x1af   : > { %1285 = vmatmul.msk.f32.gmra.mxu3 %vm272_vm0, %v483_v53 }
 0x1b2   : > { %v458_v54 = vpop.f32.mrf.mxu2 }
 0x1b3   : > { %v1770_v55 = vsub.f32 %v1655_v19, %v458_v54 }
 0x1b5   : > { %v484_v56 = vmul.f32 %v1770_v55, %v1770_v55 }
 0x1b7   : > { %1286 = vmatmul.msk.f32.gmra.mxu3 %vm272_vm0, %v484_v56 }
 0x1ba   : > { %v461_v57 = vpop.f32.mrf.mxu2 }
 0x1bb   : > { %v1776_v58 = vsub.f32 %v1657_v20, %v461_v57 }
 0x1bd   : > { %v485_v59 = vmul.f32 %v1776_v58, %v1776_v58 }
 0x1bf   : > { %1287 = vmatmul.msk.f32.gmra.mxu3 %vm272_vm0, %v485_v59 }
 0x1c2   : > { %v464_v60 = vpop.f32.mrf.mxu3 }
 0x1c3   : > { %v1782_v61 = vsub.f32 %v1676_v25, %v464_v60 }
 0x1c5   : > { %v486_v62 = vmul.f32 %v1782_v61, %v1782_v61 }
 0x1c7   : > { %1288 = vmatmul.msk.f32.gmra.mxu3 %vm272_vm0, %v486_v62 }
 0x1ca   : > { %v467_v63 = vpop.f32.mrf.mxu3 }
 0x1cb   : > { %v1788_v0 = vsub.f32 %v1681_v26, %v467_v63 }
 0x1cd   : > { %v487_v1 = vmul.f32 %v1788_v0, %v1788_v0 }
 0x1cf   : > { %1289 = vmatmul.msk.f32.gmra.mxu3 %vm272_vm0, %v487_v1 }
 0x1d2   : > { %v470_v3 = vpop.f32.mrf.mxu3 }
 0x1d3   : > { %v1794_v4 = vsub.f32 %v1686_v27, %v470_v3 }
 0x1d5   : > { %v488_v5 = vmul.f32 %v1794_v4, %v1794_v4 }
 0x1d7   : > { %1290 = vmatmul.msk.f32.gmra.mxu3 %vm272_vm0, %v488_v5 }
 0x1df   : > { %1321 = vmatmul.msk.f32.vlgmr.msra.gmra.mxu3 %vm403_vm2, %v824_v2 }
 0x1e7   : > { %1322 = vmatmul.msk.f32.gmra.mxu3 %vm403_vm2, %v827_v6 }
 0x1ef   : > { %1323 = vmatmul.msk.f32.gmra.mxu3 %vm403_vm2, %v830_v7 }
 0x1f7   : > { %1324 = vmatmul.msk.f32.gmra.mxu3 %vm403_vm2, %v833_v8 }
 0x1ff   : > { %1325 = vmatmul.msk.f32.gmra.mxu3 %vm403_vm2, %v836_v9 }
 0x207   : > { %1326 = vmatmul.msk.f32.gmra.mxu3 %vm403_vm2, %v839_v10 }
 0x20f   : > { %1327 = vmatmul.msk.f32.gmra.mxu3 %vm403_vm2, %v842_v11 }
 0x217   : > { %1328 = vmatmul.msk.f32.gmra.mxu3 %vm403_vm2, %v845_v12 }
 0x222   : > { %v530_v13 = vpop.f32.mrf.mxu3 }
 0x223   : > { %v531_v14 = vadd.f32 1e-05, %v530_v13 }
 0x225   : > { %1410 = vrsqrt.f32 %v531_v14  ;;  %vm560_vm4 = vweird.f32 %v531_v14 }
 0x22a   : > { %v533_v15 = vpop.f32.mrf.mxu3 }
 0x22b   : > { %v1411_v16 = vpop.eup %1410  ;;  %v534_v17 = vadd.f32 1e-05, %v533_v15 }
 0x22c   : > { %v555_v18 = vmul.f32 %v1411_v16, %v531_v14  ;;  %vm561_vm3 = vweird.f32 %v1411_v16 }
 0x22d   : > { %1412 = vrsqrt.f32 %v534_v17  ;;  %vm562_vm5 = vmor %vm560_vm4, %vm561_vm3  ;;  %vm570_vm7 = vweird.f32 %v534_v17 }
 0x22e   : > { %v556_v19 = vmul.f32 %v1411_v16, %v555_v18 }
 0x230   : > { %v557_v20 = vmul.f32 0.5, %v556_v19 }
 0x232   : > { %v558_v21 = vsub.f32 1.5, %v557_v20  ;;  %v536_v22 = vpop.f32.mrf.mxu3 }
 0x233   : > { %v1413_v23 = vpop.eup %1412  ;;  %v537_v24 = vadd.f32 1e-05, %v536_v22 }
 0x234   : > { %v565_v25 = vmul.f32 %v1413_v23, %v534_v17  ;;  %v559_v26 = vmul.f32 %v1411_v16, %v558_v21  ;;  %vm571_vm6 = vweird.f32 %v1413_v23 }
 0x235   : > { %1414 = vrsqrt.f32 %v537_v24  ;;  %vm572_vm8 = vmor %vm570_vm7, %vm571_vm6  ;;  %vm580_vm10 = vweird.f32 %v537_v24 }
 0x236   : > { %v566_v27 = vmul.f32 %v1413_v23, %v565_v25  ;;  %v563_v28 = vsel %vm562_vm5, %v1411_v16, %v559_v26 }
 0x237   : > { %1292 = vmatmul.msk.f32.vlgmr.msrb.gmra.mxu2 %vm403_vm2, %v563_v28 }
 0x238   : > { %v567_v29 = vmul.f32 0.5, %v566_v27 }
 0x23a   : > { %v568_v30 = vsub.f32 1.5, %v567_v29  ;;  %v539_v31 = vpop.f32.mrf.mxu3 }
 0x23b   : > { %v1415_v32 = vpop.eup %1414  ;;  %v540_v33 = vadd.f32 1e-05, %v539_v31 }
 0x23c   : > { %v575_v35 = vmul.f32 %v1415_v32, %v537_v24  ;;  %v569_v37 = vmul.f32 %v1413_v23, %v568_v30  ;;  %vm581_vm9 = vweird.f32 %v1415_v32 }
 0x23d   : > { %1416 = vrsqrt.f32 %v540_v33  ;;  %vm582_vm11 = vmor %vm580_vm10, %vm581_vm9  ;;  %vm590_vm13 = vweird.f32 %v540_v33 }
 0x23e   : > { %v576_v39 = vmul.f32 %v1415_v32, %v575_v35  ;;  %v573_v45 = vsel %vm572_vm8, %v1413_v23, %v569_v37 }
 0x23f   : > { %1293 = vmatmul.msk.f32.gmra.mxu2 %vm403_vm2, %v573_v45 }
 0x240   : > { %v577_v47 = vmul.f32 0.5, %v576_v39 }
 0x242   : > { %v578_v48 = vsub.f32 1.5, %v577_v47  ;;  %v542_v50 = vpop.f32.mrf.mxu3 }
 0x243   : > { %v1417_v51 = vpop.eup %1416  ;;  %v543_v53 = vadd.f32 1e-05, %v542_v50 }
 0x244   : > { %v585_v54 = vmul.f32 %v1417_v51, %v540_v33  ;;  %v579_v56 = vmul.f32 %v1415_v32, %v578_v48  ;;  %vm591_vm12 = vweird.f32 %v1417_v51 }
 0x245   : > { %1418 = vrsqrt.f32 %v543_v53  ;;  %vm592_vm14 = vmor %vm590_vm13, %vm591_vm12  ;;  %vm600_vm1 = vweird.f32 %v543_v53 }
 0x246   : > { %v586_v57 = vmul.f32 %v1417_v51, %v585_v54  ;;  %v583_v59 = vsel %vm582_vm11, %v1415_v32, %v579_v56 }
 0x247   : > { %1294 = vmatmul.msk.f32.gmra.mxu2 %vm403_vm2, %v583_v59 }
 0x248   : > { %v587_v60 = vmul.f32 0.5, %v586_v57 }
 0x24a   : > { %v588_v62 = vsub.f32 1.5, %v587_v60  ;;  %v545_v63 = vpop.f32.mrf.mxu3 }
 0x24b   : > { %v1419_v1 = vpop.eup %1418  ;;  %v546_v2 = vadd.f32 1e-05, %v545_v63 }
 0x24c   : > { %v595_v3 = vmul.f32 %v1419_v1, %v543_v53  ;;  %v589_v5 = vmul.f32 %v1417_v51, %v588_v62  ;;  %vm601_vm15 = vweird.f32 %v1419_v1 }
 0x24d   : > { %1420 = vrsqrt.f32 %v546_v2  ;;  %vm602_vm3 = vmor %vm600_vm1, %vm601_vm15  ;;  %vm610_vm5 = vweird.f32 %v546_v2 }
 0x24e   : > { %v596_v6 = vmul.f32 %v1419_v1, %v595_v3  ;;  %v593_v7 = vsel %vm592_vm14, %v1417_v51, %v589_v5 }
 0x24f   : > { %1295 = vmatmul.msk.f32.gmra.mxu2 %vm403_vm2, %v593_v7 }
 0x250   : > { %v597_v8 = vmul.f32 0.5, %v596_v6 }
 0x252   : > { %v598_v9 = vsub.f32 1.5, %v597_v8  ;;  %v548_v10 = vpop.f32.mrf.mxu3 }
 0x253   : > { %v1421_v11 = vpop.eup %1420  ;;  %v549_v12 = vadd.f32 1e-05, %v548_v10 }
 0x254   : > { %v605_v13 = vmul.f32 %v1421_v11, %v546_v2  ;;  %v599_v14 = vmul.f32 %v1419_v1, %v598_v9  ;;  %vm611_vm4 = vweird.f32 %v1421_v11 }
 0x255   : > { %1422 = vrsqrt.f32 %v549_v12  ;;  %vm612_vm6 = vmor %vm610_vm5, %vm611_vm4  ;;  %vm620_vm8 = vweird.f32 %v549_v12 }
 0x256   : > { %v606_v15 = vmul.f32 %v1421_v11, %v605_v13  ;;  %v603_v16 = vsel %vm602_vm3, %v1419_v1, %v599_v14 }
 0x257   : > { %1296 = vmatmul.msk.f32.gmra.mxu2 %vm403_vm2, %v603_v16 }
 0x258   : > { %v607_v17 = vmul.f32 0.5, %v606_v15 }
 0x25a   : > { %v608_v18 = vsub.f32 1.5, %v607_v17  ;;  %v551_v19 = vpop.f32.mrf.mxu3 }
 0x25b   : > { %v1423_v20 = vpop.eup %1422  ;;  %v552_v21 = vadd.f32 1e-05, %v551_v19 }
 0x25c   : > { %v615_v22 = vmul.f32 %v1423_v20, %v549_v12  ;;  %v609_v23 = vmul.f32 %v1421_v11, %v608_v18  ;;  %vm621_vm7 = vweird.f32 %v1423_v20 }
 0x25d   : > { %1424 = vrsqrt.f32 %v552_v21  ;;  %vm622_vm9 = vmor %vm620_vm8, %vm621_vm7  ;;  %vm630_vm11 = vweird.f32 %v552_v21 }
 0x25e   : > { %v616_v24 = vmul.f32 %v1423_v20, %v615_v22  ;;  %v613_v25 = vsel %vm612_vm6, %v1421_v11, %v609_v23 }
 0x25f   : > { %1297 = vmatmul.msk.f32.gmra.mxu2 %vm403_vm2, %v613_v25 }
 0x260   : > { %v617_v26 = vmul.f32 0.5, %v616_v24 }
 0x262   : > { %v618_v27 = vsub.f32 1.5, %v617_v26  ;;  %v889_v28 = vpop.f32.mrf.mxu3 }
 0x263   : > { %v1425_v29 = vpop.eup %1424  ;;  %v1816_v48 = vsub.f32 %v1714_v34, %v889_v28 }
 0x264   : > { %v625_v30 = vmul.f32 %v1425_v29, %v552_v21  ;;  %v619_v31 = vmul.f32 %v1423_v20, %v618_v27  ;;  %vm631_vm10 = vweird.f32 %v1425_v29 }
 0x265   : > { %vm632_vm12 = vmor %vm630_vm11, %vm631_vm10  ;;  %v921_v51 = vmul.f32 %v1816_v48, %v1816_v48 }
 0x266   : > { %v626_v32 = vmul.f32 %v1425_v29, %v625_v30  ;;  %v623_v33 = vsel %vm622_vm9, %v1423_v20, %v619_v31 }
 0x267   : > { %1298 = vmatmul.msk.f32.gmra.mxu2 %vm403_vm2, %v623_v33 }
 0x268   : > { %v627_v35 = vmul.f32 0.5, %v626_v32 }
 0x26a   : > { %v628_v37 = vsub.f32 1.5, %v627_v35  ;;  %v892_v39 = vpop.f32.mrf.mxu3 }
 0x26b   : > { %v1822_v53 = vsub.f32 %v1719_v36, %v892_v39 }
 0x26c   : > { %v629_v45 = vmul.f32 %v1425_v29, %v628_v37 }
 0x26d   : > { %v922_v54 = vmul.f32 %v1822_v53, %v1822_v53 }
 0x26e   : > { %v633_v47 = vsel %vm632_vm12, %v1425_v29, %v629_v45 }
 0x26f   : > { %1299 = vmatmul.msk.f32.gmra.mxu2 %vm403_vm2, %v633_v47 }
 0x272   : > { %v895_v50 = vpop.f32.mrf.mxu3 }
 0x273   : > { %v1828_v57 = vsub.f32 %v1725_v38, %v895_v50 }
 0x275   : > { %v923_v34 = vmul.f32 %v1828_v57, %v1828_v57 }
 0x277   : > { %1329 = vmatmul.msk.f32.vlgmr.msra.gmra.mxu2 %vm272_vm0, %v921_v51 }
 0x27a   : > { %v898_v56 = vpop.f32.mrf.mxu3 }
 0x27b   : > { %v1834_v60 = vsub.f32 %v1730_v40, %v898_v56 }
 0x27d   : > { %v924_v36 = vmul.f32 %v1834_v60, %v1834_v60 }
 0x27f   : > { %1330 = vmatmul.msk.f32.gmra.mxu2 %vm272_vm0, %v922_v54 }
 0x282   : > { %v901_v59 = vpop.f32.mrf.mxu3 }
 0x283   : > { %v1840_v62 = vsub.f32 %v1735_v41, %v901_v59 }
 0x285   : > { %v925_v63 = vmul.f32 %v1840_v62, %v1840_v62 }
 0x287   : > { %1331 = vmatmul.msk.f32.gmra.mxu2 %vm272_vm0, %v923_v34 }
 0x28a   : > { %v904_v38 = vpop.f32.mrf.mxu3 }
 0x28b   : > { %v1846_v1 = vsub.f32 %v1739_v42, %v904_v38 }
 0x28d   : > { %v926_v2 = vmul.f32 %v1846_v1, %v1846_v1 }
 0x28f   : > { %1332 = vmatmul.msk.f32.gmra.mxu2 %vm272_vm0, %v924_v36 }
 0x292   : > { %v907_v40 = vpop.f32.mrf.mxu3 }
 0x293   : > { %v1852_v3 = vsub.f32 %v1743_v43, %v907_v40  ;;  %v1867_v43 = vld [vmem:[%s2004_s4] ss:$0 sm:$0xff] }
 0x295   : > { %v927_v41 = vmul.f32 %v1852_v3, %v1852_v3 }
 0x297   : > { %1333 = vmatmul.msk.f32.gmra.mxu2 %vm272_vm0, %v925_v63 }
 0x29a   : > { %v910_v5 = vpop.f32.mrf.mxu3 }
 0x29b   : > { %v1858_v6 = vsub.f32 %v1747_v44, %v910_v5  ;;  %v1875_v44 = vld [vmem:[%s2005_s5] ss:$0 sm:$0xff] }
 0x29d   : > { %v928_v42 = vmul.f32 %v1858_v6, %v1858_v6 }
 0x29f   : > { %1334 = vmatmul.msk.f32.gmra.mxu2 %vm272_vm0, %v926_v2 }
 0x2a7   : > { %1335 = vmatmul.msk.f32.gmra.mxu2 %vm272_vm0, %v927_v41 }
 0x2af   : > { %1336 = vmatmul.msk.f32.gmra.mxu2 %vm272_vm0, %v928_v42 }
 0x2ba   : > { %v675_v7 = vpop.f32.mrf.mxu2 }
 0x2bb   : > { %v699_v8 = vmul.f32 %v675_v7, %v1752_v46 }
 0x2bd   : > { %v710_v9 = vmul.f32 %v1867_v43, %v699_v8 }
 0x2bf   : > { %v721_v10 = vadd.f32 %v1875_v44, %v710_v9 }
 0x2c1   : > { %729 = vst.msk [vmem:[%s1879_s16] sm:$0xff] %vm272_vm0, %v721_v10 }
 0x2c2   : > { %v678_v11 = vpop.f32.mrf.mxu2 }
 0x2c3   : > { %v700_v46 = vmul.f32 %v678_v11, %v1758_v49 }
 0x2c5   : > { %v711_v12 = vmul.f32 %v1867_v43, %v700_v46 }
 0x2c7   : > { %v722_v13 = vadd.f32 %v1875_v44, %v711_v12 }
 0x2c9   : > { %730 = vst.msk [vmem:[%s1879_s16 + $0x10] sm:$0xff] %vm272_vm0, %v722_v13 }
 0x2ca   : > { %v681_v14 = vpop.f32.mrf.mxu2 }
 0x2cb   : > { %v701_v15 = vmul.f32 %v681_v14, %v1764_v52 }
 0x2cd   : > { %v712_v16 = vmul.f32 %v1867_v43, %v701_v15 }
 0x2cf   : > { %v723_v17 = vadd.f32 %v1875_v44, %v712_v16 }
 0x2d1   : > { %731 = vst.msk [vmem:[%s1879_s16 + $0x20] sm:$0xff] %vm272_vm0, %v723_v17 }
 0x2d2   : > { %v684_v18 = vpop.f32.mrf.mxu2 }
 0x2d3   : > { %v702_v49 = vmul.f32 %v684_v18, %v1770_v55 }
 0x2d5   : > { %v713_v19 = vmul.f32 %v1867_v43, %v702_v49 }
 0x2d7   : > { %v724_v20 = vadd.f32 %v1875_v44, %v713_v19 }
 0x2d9   : > { %732 = vst.msk [vmem:[%s1879_s16 + $0x30] sm:$0xff] %vm272_vm0, %v724_v20 }
 0x2da   : > { %v687_v21 = vpop.f32.mrf.mxu2 }
 0x2db   : > { %v703_v52 = vmul.f32 %v687_v21, %v1776_v58 }
 0x2dd   : > { %v714_v22 = vmul.f32 %v1867_v43, %v703_v52 }
 0x2df   : > { %v725_v23 = vadd.f32 %v1875_v44, %v714_v22 }
 0x2e1   : > { %733 = vst.msk [vmem:[%s1879_s16 + $0x40] sm:$0xff] %vm272_vm0, %v725_v23 }
 0x2e2   : > { %v690_v24 = vpop.f32.mrf.mxu2 }
 0x2e3   : > { %v704_v55 = vmul.f32 %v690_v24, %v1782_v61 }
 0x2e5   : > { %v715_v25 = vmul.f32 %v1867_v43, %v704_v55 }
 0x2e7   : > { %v726_v26 = vadd.f32 %v1875_v44, %v715_v25 }
 0x2e9   : > { %734 = vst.msk [vmem:[%s1879_s16 + $0x50] sm:$0xff] %vm272_vm0, %v726_v26 }
 0x2ea   : > { %v693_v27 = vpop.f32.mrf.mxu2 }
 0x2eb   : > { %v705_v28 = vmul.f32 %v693_v27, %v1788_v0 }
 0x2ed   : > { %v716_v58 = vmul.f32 %v1867_v43, %v705_v28 }
 0x2ef   : > { %v727_v29 = vadd.f32 %v1875_v44, %v716_v58 }
 0x2f1   : > { %735 = vst.msk [vmem:[%s1879_s16 + $0x60] sm:$0xff] %vm272_vm0, %v727_v29 }
 0x2f2   : > { %v696_v30 = vpop.f32.mrf.mxu2 }
 0x2f3   : > { %v706_v31 = vmul.f32 %v696_v30, %v1794_v4 }
 0x2f5   : > { %v717_v61 = vmul.f32 %v1867_v43, %v706_v31 }
 0x2f7   : > { %v728_v32 = vadd.f32 %v1875_v44, %v717_v61 }
 0x2f9   : > { %736 = vst.msk [vmem:[%s1879_s16 + $0x70] sm:$0xff] %vm272_vm0, %v728_v32 }
 0x2fa   : > { %v970_v33 = vpop.f32.mrf.mxu2 }
 0x2fb   : > { %v971_v35 = vadd.f32 1e-05, %v970_v33 }
 0x2fd   : > { %1426 = vrsqrt.f32 %v971_v35  ;;  %vm1000_vm14 = vweird.f32 %v971_v35 }
 0x302   : > { %v973_v37 = vpop.f32.mrf.mxu2 }
 0x303   : > { %v1427_v0 = vpop.eup %1426  ;;  %v974_v39 = vadd.f32 1e-05, %v973_v37 }
 0x304   : > { %v995_v45 = vmul.f32 %v1427_v0, %v971_v35  ;;  %vm1001_vm13 = vweird.f32 %v1427_v0 }
 0x305   : > { %1428 = vrsqrt.f32 %v974_v39  ;;  %vm1002_vm15 = vmor %vm1000_vm14, %vm1001_vm13  ;;  %vm1010_vm3 = vweird.f32 %v974_v39 }
 0x306   : > { %v996_v47 = vmul.f32 %v1427_v0, %v995_v45 }
 0x308   : > { %v997_v50 = vmul.f32 0.5, %v996_v47 }
 0x30a   : > { %v998_v51 = vsub.f32 1.5, %v997_v50  ;;  %v976_v54 = vpop.f32.mrf.mxu2 }
 0x30b   : > { %v1429_v4 = vpop.eup %1428  ;;  %v977_v56 = vadd.f32 1e-05, %v976_v54 }
 0x30c   : > { %v999_v34 = vmul.f32 %v1427_v0, %v998_v51  ;;  %v1005_v59 = vmul.f32 %v1429_v4, %v974_v39  ;;  %vm1011_vm1 = vweird.f32 %v1429_v4 }
 0x30d   : > { %1430 = vrsqrt.f32 %v977_v56  ;;  %vm1012_vm4 = vmor %vm1010_vm3, %vm1011_vm1  ;;  %vm1020_vm6 = vweird.f32 %v977_v56 }
 0x30e   : > { %v1006_v36 = vmul.f32 %v1429_v4, %v1005_v59  ;;  %v1003_v38 = vsel %vm1002_vm15, %v1427_v0, %v999_v34 }
 0x30f   : > { %1338 = vmatmul.msk.f32.vlgmr.msra.gmra.mxu0 %vm403_vm2, %v1003_v38 }
 0x310   : > { %v1007_v63 = vmul.f32 0.5, %v1006_v36 }
 0x312   : > { %v1008_v40 = vsub.f32 1.5, %v1007_v63  ;;  %v979_v2 = vpop.f32.mrf.mxu2 }
 0x313   : > { %v1431_v41 = vpop.eup %1430  ;;  %v980_v5 = vadd.f32 1e-05, %v979_v2 }
 0x314   : > { %v1015_v42 = vmul.f32 %v1431_v41, %v977_v56  ;;  %v1009_v7 = vmul.f32 %v1429_v4, %v1008_v40  ;;  %vm1021_vm5 = vweird.f32 %v1431_v41 }
 0x315   : > { %1432 = vrsqrt.f32 %v980_v5  ;;  %vm1022_vm7 = vmor %vm1020_vm6, %vm1021_vm5  ;;  %vm1030_vm9 = vweird.f32 %v980_v5 }
 0x316   : > { %v1016_v8 = vmul.f32 %v1431_v41, %v1015_v42  ;;  %v1013_v9 = vsel %vm1012_vm4, %v1429_v4, %v1009_v7 }
 0x317   : > { %1339 = vmatmul.msk.f32.gmra.mxu0 %vm403_vm2, %v1013_v9 }
 0x318   : > { %v1017_v10 = vmul.f32 0.5, %v1016_v8 }
 0x31a   : > { %v1018_v11 = vsub.f32 1.5, %v1017_v10  ;;  %v982_v46 = vpop.f32.mrf.mxu2 }
 0x31b   : > { %v1433_v12 = vpop.eup %1432  ;;  %v983_v13 = vadd.f32 1e-05, %v982_v46 }
 0x31c   : > { %v1025_v14 = vmul.f32 %v1433_v12, %v980_v5  ;;  %v1019_v15 = vmul.f32 %v1431_v41, %v1018_v11  ;;  %vm1031_vm8 = vweird.f32 %v1433_v12 }
 0x31d   : > { %1434 = vrsqrt.f32 %v983_v13  ;;  %vm1032_vm10 = vmor %vm1030_vm9, %vm1031_vm8  ;;  %vm1040_vm12 = vweird.f32 %v983_v13 }
 0x31e   : > { %v1026_v16 = vmul.f32 %v1433_v12, %v1025_v14  ;;  %v1023_v17 = vsel %vm1022_vm7, %v1431_v41, %v1019_v15 }
 0x31f   : > { %1340 = vmatmul.msk.f32.gmra.mxu0 %vm403_vm2, %v1023_v17 }
 0x320   : > { %v1027_v18 = vmul.f32 0.5, %v1026_v16 }
 0x322   : > { %v1028_v49 = vsub.f32 1.5, %v1027_v18  ;;  %v985_v19 = vpop.f32.mrf.mxu2 }
 0x323   : > { %v1435_v20 = vpop.eup %1434  ;;  %v986_v21 = vadd.f32 1e-05, %v985_v19 }
 0x324   : > { %v1035_v52 = vmul.f32 %v1435_v20, %v983_v13  ;;  %v1029_v22 = vmul.f32 %v1433_v12, %v1028_v49  ;;  %vm1041_vm11 = vweird.f32 %v1435_v20 }
 0x325   : > { %1436 = vrsqrt.f32 %v986_v21  ;;  %vm1042_vm13 = vmor %vm1040_vm12, %vm1041_vm11  ;;  %vm1050_vm15 = vweird.f32 %v986_v21 }
 0x326   : > { %v1036_v23 = vmul.f32 %v1435_v20, %v1035_v52  ;;  %v1033_v24 = vsel %vm1032_vm10, %v1433_v12, %v1029_v22 }
 0x327   : > { %1341 = vmatmul.msk.f32.gmra.mxu0 %vm403_vm2, %v1033_v24 }
 0x328   : > { %v1037_v55 = vmul.f32 0.5, %v1036_v23 }
 0x32a   : > { %v1038_v25 = vsub.f32 1.5, %v1037_v55  ;;  %v988_v26 = vpop.f32.mrf.mxu2 }
 0x32b   : > { %v1437_v27 = vpop.eup %1436  ;;  %v989_v28 = vadd.f32 1e-05, %v988_v26 }
 0x32c   : > { %v1045_v58 = vmul.f32 %v1437_v27, %v986_v21  ;;  %v1039_v29 = vmul.f32 %v1435_v20, %v1038_v25  ;;  %vm1051_vm14 = vweird.f32 %v1437_v27 }
 0x32d   : > { %1438 = vrsqrt.f32 %v989_v28  ;;  %vm1052_vm1 = vmor %vm1050_vm15, %vm1051_vm14  ;;  %vm1060_vm4 = vweird.f32 %v989_v28 }
 0x32e   : > { %v1046_v30 = vmul.f32 %v1437_v27, %v1045_v58  ;;  %v1043_v31 = vsel %vm1042_vm13, %v1435_v20, %v1039_v29 }
 0x32f   : > { %1342 = vmatmul.msk.f32.gmra.mxu0 %vm403_vm2, %v1043_v31 }
 0x330   : > { %v1047_v61 = vmul.f32 0.5, %v1046_v30 }
 0x332   : > { %v1048_v32 = vsub.f32 1.5, %v1047_v61  ;;  %v991_v33 = vpop.f32.mrf.mxu2 }
 0x333   : > { %v1439_v35 = vpop.eup %1438  ;;  %v992_v37 = vadd.f32 1e-05, %v991_v33 }
 0x334   : > { %v1055_v0 = vmul.f32 %v1439_v35, %v989_v28  ;;  %v1049_v39 = vmul.f32 %v1437_v27, %v1048_v32  ;;  %vm1061_vm3 = vweird.f32 %v1439_v35 }
 0x335   : > { %1440 = vrsqrt.f32 %v992_v37  ;;  %vm1062_vm5 = vmor %vm1060_vm4, %vm1061_vm3  ;;  %vm1070_vm7 = vweird.f32 %v992_v37 }
 0x336   : > { %v1056_v45 = vmul.f32 %v1439_v35, %v1055_v0  ;;  %v1053_v47 = vsel %vm1052_vm1, %v1437_v27, %v1049_v39 }
 0x337   : > { %1343 = vmatmul.msk.f32.gmra.mxu0 %vm403_vm2, %v1053_v47 }
 0x338   : > { %v1057_v50 = vmul.f32 0.5, %v1056_v45 }
 0x33a   : > { %v1058_v51 = vsub.f32 1.5, %v1057_v50 }
 0x33b   : > { %v1441_v54 = vpop.eup %1440 }
 0x33c   : > { %v1065_v4 = vmul.f32 %v1441_v54, %v992_v37  ;;  %v1059_v56 = vmul.f32 %v1439_v35, %v1058_v51  ;;  %vm1071_vm6 = vweird.f32 %v1441_v54 }
 0x33d   : > { %vm1072_vm8 = vmor %vm1070_vm7, %vm1071_vm6 }
 0x33e   : > { %v1066_v34 = vmul.f32 %v1441_v54, %v1065_v4  ;;  %v1063_v59 = vsel %vm1062_vm5, %v1439_v35, %v1059_v56 }
 0x33f   : > { %1344 = vmatmul.msk.f32.gmra.mxu0 %vm403_vm2, %v1063_v59 }
 0x340   : > { %v1067_v36 = vmul.f32 0.5, %v1066_v34 }
 0x342   : > { %v1068_v38 = vsub.f32 1.5, %v1067_v36 }
 0x344   : > { %v1069_v63 = vmul.f32 %v1441_v54, %v1068_v38 }
 0x346   : > { %v1073_v40 = vsel %vm1072_vm8, %v1441_v54, %v1069_v63 }
 0x347   : > { %1345 = vmatmul.msk.f32.gmra.mxu0 %vm403_vm2, %v1073_v40 }
 0x38c   : > { %v1115_v2 = vpop.f32.mrf.mxu0 }
 0x38d   : > { %v1139_v41 = vmul.f32 %v1115_v2, %v1816_v48 }
 0x38f   : > { %v1147_v5 = vmul.f32 %v1867_v43, %v1139_v41 }
 0x391   : > { %v1155_v42 = vadd.f32 %v1875_v44, %v1147_v5 }
 0x393   : > { %1346 = vst.msk [vmem:[%s1879_s16 + $0x8] sm:$0xff] %vm272_vm0, %v1155_v42 }
 0x394   : > { %v1118_v7 = vpop.f32.mrf.mxu0 }
 0x395   : > { %v1140_v8 = vmul.f32 %v1118_v7, %v1822_v53 }
 0x397   : > { %v1148_v9 = vmul.f32 %v1867_v43, %v1140_v8 }
 0x399   : > { %v1156_v10 = vadd.f32 %v1875_v44, %v1148_v9 }
 0x39b   : > { %1347 = vst.msk [vmem:[%s1879_s16 + $0x18] sm:$0xff] %vm272_vm0, %v1156_v10 }
 0x39c   : > { %v1121_v11 = vpop.f32.mrf.mxu0 }
 0x39d   : > { %v1141_v48 = vmul.f32 %v1121_v11, %v1828_v57 }
 0x39f   : > { %v1149_v46 = vmul.f32 %v1867_v43, %v1141_v48 }
 0x3a1   : > { %v1157_v12 = vadd.f32 %v1875_v44, %v1149_v46 }
 0x3a3   : > { %1348 = vst.msk [vmem:[%s1879_s16 + $0x28] sm:$0xff] %vm272_vm0, %v1157_v12 }
 0x3a4   : > { %v1124_v13 = vpop.f32.mrf.mxu0 }
 0x3a5   : > { %v1142_v53 = vmul.f32 %v1124_v13, %v1834_v60 }
 0x3a7   : > { %v1150_v14 = vmul.f32 %v1867_v43, %v1142_v53 }
 0x3a9   : > { %v1158_v15 = vadd.f32 %v1875_v44, %v1150_v14 }
 0x3ab   : > { %1349 = vst.msk [vmem:[%s1879_s16 + $0x38] sm:$0xff] %vm272_vm0, %v1158_v15 }
 0x3ac   : > { %v1127_v16 = vpop.f32.mrf.mxu0 }
 0x3ad   : > { %v1143_v57 = vmul.f32 %v1127_v16, %v1840_v62 }
 0x3af   : > { %v1151_v17 = vmul.f32 %v1867_v43, %v1143_v57 }
 0x3b1   : > { %v1159_v18 = vadd.f32 %v1875_v44, %v1151_v17 }
 0x3b3   : > { %1350 = vst.msk [vmem:[%s1879_s16 + $0x48] sm:$0xff] %vm272_vm0, %v1159_v18 }
 0x3b4   : > { %v1130_v49 = vpop.f32.mrf.mxu0 }
 0x3b5   : > { %v1144_v60 = vmul.f32 %v1130_v49, %v1846_v1 }
 0x3b7   : > { %v1152_v19 = vmul.f32 %v1867_v43, %v1144_v60 }
 0x3b9   : > { %v1160_v20 = vadd.f32 %v1875_v44, %v1152_v19 }
 0x3bb   : > { %1351 = vst.msk [vmem:[%s1879_s16 + $0x58] sm:$0xff] %vm272_vm0, %v1160_v20 }
 0x3bc   : > { %v1133_v21 = vpop.f32.mrf.mxu0 }
 0x3bd   : > { %v1145_v62 = vmul.f32 %v1133_v21, %v1852_v3 }
 0x3bf   : > { %v1153_v52 = vmul.f32 %v1867_v43, %v1145_v62 }
 0x3c1   : > { %v1161_v22 = vadd.f32 %v1875_v44, %v1153_v52 }
 0x3c3   : > { %1352 = vst.msk [vmem:[%s1879_s16 + $0x68] sm:$0xff] %vm272_vm0, %v1161_v22 }
 0x3c4   : > { %v1136_v1 = vpop.f32.mrf.mxu0 }
 0x3c5   : > { %v1146_v23 = vmul.f32 %v1136_v1, %v1858_v6 }
 0x3c7   : > { %v1154_v24 = vmul.f32 %v1867_v43, %v1146_v23 }
 0x3c9   : > { %v1162_v3 = vadd.f32 %v1875_v44, %v1154_v24 }
 0x3cb   : > { %1353 = vst.msk [vmem:[%s1879_s16 + $0x78] sm:$0xff] %vm272_vm0, %v1162_v3 }
 0x3cc   : > { %1469 = shalt.err (!%p1466_p3)
}
 0x3cd   : > { %s1506_s10 = smov 128   ;;  %s1507_s16 = smov 8  }
 0x3ce   : > { %1367 = dma.vmem_to_hbm [thread:$0]  (%p1581_p5), %s1187_s26, 2048, %s1189_s28, %s1173_s25, %s1506_s10, %s1506_s10, %s1507_s16  }
 0x3cf PF: > { %p1373_p4 = scmp.ge.s32.totalorder %s1504_s24, 2  ;;  %s1203_s17 = sand.u32 1, %s1492_s21  }
 0x3d0   : > { %s1204_s18 = scalar_lea.sflag [#allocation3], %s1203_s17 }
 0x3d1   : > { %p1370_p7 = pnand %p1373_p4, %p1585_p6 }
 0x3d3   : > { %p1371_p8 = pneg %p1370_p7 }
 0x3d5   : > { %1487 = dma.done.wait (%p1371_p8), %s1204_s18, 2048  }
 0x3d6   : > { %1489 = vsyncadd (%p1371_p8), %s1204_s18, 4294965248  ;;  %p16_p9 = scmp.ge.s32.totalorder %s1568_s27, 4   ;;  %s2009_s21 = smov %s1496_s22 }
 0x3d7   : > { %s2010_s22 = smov %s1500_s23  ;;  %s2011_s23 = smov %s1579_s30 }
 0x3d8   : > { %s2012_s24 = smov %s1568_s27  ;;  %18 = sbr.rel (!%p16_p9) target bundleno = 3 (0x3), region = 81 }
 0x3dd   :  { %1210 = vsyncpa [#allocation3], 1 }
 0x3de   :  { %1212 = vsyncpa [#allocation3 + $0x1], 1 }

</bundles_post_ra>
